<compile_context>
chip_gen: v7x
topology: tpu7x:2x2x1
jax: 0.10.0
libtpu: 0.0.40
codegen_flags: <defaults>
</compile_context>

<pallas_src>
import functools

import jax
import jax.numpy as jnp
from jax.experimental import pallas as pl
from jax.experimental.pallas import tpu as pltpu

_LANE = 128     # vreg lane width -> lane-dense slab
_SUBLANE = 8    # vreg sublane count -> vreg-shaped partial accumulators


def _waypoint_loss_kernel(pred_ref, target_ref, mask_ref, num_ref, den_ref,
                          *, rows, tile_rows):
    """Per-tile partial sums: num = sum(mask*(p-t)^2), den = sum(mask)."""
    # Upcast on-core (inputs may arrive bf16; keep vector math in f32).
    p = pred_ref[...].astype(jnp.float32)
    t = target_ref[...].astype(jnp.float32)
    m = mask_ref[...].astype(jnp.float32)   # int8 {0,1} -> f32

    d = p - t
    if rows % tile_rows != 0:
        # Ragged last block: Pallas pads the block with unspecified data
        # (possibly NaN/Inf); mask-multiply alone is NOT sufficient, so zero
        # both the diff and the mask for out-of-range rows.
        i = pl.program_id(0)
        row_ids = (jax.lax.broadcasted_iota(jnp.int32, (tile_rows, _LANE), 0)
                   + i * tile_rows)
        valid = row_ids < rows
        d = jnp.where(valid, d, 0.0)
        m = jnp.where(valid, m, 0.0)

    sq = d * d * m
    # Vreg-shaped partial sums (pure VPU vreg adds); the cross-sublane/lane
    # XLU reduce and the divide are deferred to the tiny wrapper epilogue.
    num_ref[...] = sq.reshape(tile_rows // _SUBLANE, _SUBLANE, _LANE).sum(axis=0)
    den_ref[...] = m.reshape(tile_rows // _SUBLANE, _SUBLANE, _LANE).sum(axis=0)


def waypoint_loss(pred_waypoints, target_waypoints, waypoints_mask):
    """Masked MSE loss averaged over valid waypoints (matches WaypointLoss.forward)."""
    B, W, C = pred_waypoints.shape
    n = B * W * C

    # Per-element mask (broadcast over the coordinate axis), kept narrow.
    # Boolean masks (the documented contract) travel as int8; float masks are
    # preserved in f32 so non-binary weights are not truncated.
    # TODO(synk): pass the compact (B*W,) mask and expand on-core instead.
    if jnp.issubdtype(waypoints_mask.dtype, jnp.floating):
        mask_dtype = jnp.float32
    else:
        mask_dtype = jnp.int8
    mask_flat = jnp.broadcast_to(
        waypoints_mask[:, :, None], (B, W, C)).reshape(n).astype(mask_dtype)

    rows = -(-n // _LANE)
    padded = rows * _LANE
    if padded == n:
        # Fast path: contiguous reshape, no data movement.
        pred2 = pred_waypoints.reshape(rows, _LANE)
        tgt2 = target_waypoints.reshape(rows, _LANE)
        mask2 = mask_flat.reshape(rows, _LANE)
    else:
        # Pad only to the next lane multiple (< 128 extra elements); padded
        # elements carry mask == 0 so they contribute nothing.
        pad = padded - n
        pred2 = jnp.pad(pred_waypoints.reshape(n), (0, pad)).reshape(rows, _LANE)
        tgt2 = jnp.pad(target_waypoints.reshape(n), (0, pad)).reshape(rows, _LANE)
        mask2 = jnp.pad(mask_flat, (0, pad)).reshape(rows, _LANE)

    # Dtype-aware tile size (~2 MiB per pred/target tile). Double-buffered
    # pred+tgt+mask ~= 9-10 MiB: under v5e's 16 MiB default scoped VMEM and
    # large enough to amortize per-grid-step overhead on v6e/v7x.
    itemsize = jnp.dtype(pred_waypoints.dtype).itemsize
    max_rows = 8192 if itemsize <= 2 else 4096
    if rows >= max_rows:
        tile_rows = max_rows
    else:
        tile_rows = ((rows + _SUBLANE - 1) // _SUBLANE) * _SUBLANE
    n_tiles = pl.cdiv(rows, tile_rows)
    out_rows = n_tiles * _SUBLANE

    kernel = functools.partial(_waypoint_loss_kernel,
                               rows=rows, tile_rows=tile_rows)

    cost = pl.CostEstimate(
        flops=6 * n,
        transcendentals=0,
        bytes_accessed=int(pred2.size * pred2.dtype.itemsize
                           + tgt2.size * tgt2.dtype.itemsize
                           + mask2.size * mask2.dtype.itemsize
                           + 2 * out_rows * _LANE * 4),
    )

    num_part, den_part = pl.pallas_call(
        kernel,
        out_shape=(jax.ShapeDtypeStruct((out_rows, _LANE), jnp.float32),
                   jax.ShapeDtypeStruct((out_rows, _LANE), jnp.float32)),
        grid_spec=pltpu.PrefetchScalarGridSpec(
            num_scalar_prefetch=0,
            grid=(n_tiles,),
            in_specs=[
                pl.BlockSpec((tile_rows, _LANE), lambda i: (i, 0)),
                pl.BlockSpec((tile_rows, _LANE), lambda i: (i, 0)),
                pl.BlockSpec((tile_rows, _LANE), lambda i: (i, 0)),
            ],
            out_specs=[
                pl.BlockSpec((_SUBLANE, _LANE), lambda i: (i, 0)),
                pl.BlockSpec((_SUBLANE, _LANE), lambda i: (i, 0)),
            ],
        ),
        compiler_params=pltpu.CompilerParams(
            # No carried state across tiles -> the axis is truly parallel;
            # on v7x both TensorCores stream independent halves of the slab.
            dimension_semantics=("parallel",),
        ),
        cost_estimate=cost,
    )(pred2, tgt2, mask2)

    # Tiny epilogue (a few KiB of partials): cross-tile reduce + single divide.
    num = num_part.sum()
    den = den_part.sum()            # == C * waypoints_mask.sum()
    return num * jnp.float32(C) / den


def _reference(pred, target, mask):
    mse = (pred.astype(jnp.float32) - target.astype(jnp.float32)) ** 2
    per_wp = mse.sum(axis=-1)
    masked = per_wp * mask.astype(jnp.float32)
    return masked.sum() / mask.astype(jnp.float32).sum()


if __name__ == "__main__":
    key = jax.random.PRNGKey(0)
    k1, k2, k3 = jax.random.split(key, 3)

    B, W = 2, 8  # batch=2, n_waypoints=8, coords=2
    pred = jax.random.normal(k1, (B, W, 2), dtype=jnp.float32)
    target = jax.random.normal(k2, (B, W, 2), dtype=jnp.float32)
    mask = jax.random.bernoulli(k3, p=0.7, shape=(B, W))  # boolean mask
    # Ensure at least one valid waypoint so the denominator is nonzero.
    mask = mask.at[0, 0].set(True)

    loss = waypoint_loss(pred, target, mask)
    loss = jax.block_until_ready(loss)

    ref = _reference(pred, target, mask)
    assert jnp.allclose(loss, ref, rtol=1e-5, atol=1e-5), (loss, ref)

    print("KERNEL_OK")
</pallas_src>

<mosaic_0001>
module attributes {stable_mosaic.version = 11 : i64} {
  func.func @_waypoint_loss_kernel(%arg0: i32, %arg1: memref<8x128xf32, #tpu.memory_space<vmem>>, %arg2: memref<8x128xf32, #tpu.memory_space<vmem>>, %arg3: memref<8x128xi8, #tpu.memory_space<vmem>>, %arg4: memref<8x128xf32, #tpu.memory_space<vmem>>, %arg5: memref<8x128xf32, #tpu.memory_space<vmem>>) attributes {dimension_semantics = [#tpu.dimension_semantics<parallel>], iteration_bounds = array<i64: 1>, scalar_prefetch = 0 : i64, scratch_operands = 0 : i64, tpu.core_type = #tpu.core_type<tc>, window_params = [{transform_indices = @transform_0, window_bounds = array<i64: 8, 128>}, {transform_indices = @transform_1, window_bounds = array<i64: 8, 128>}, {transform_indices = @transform_2, window_bounds = array<i64: 8, 128>}, {transform_indices = @transform_3, window_bounds = array<i64: 8, 128>}, {transform_indices = @transform_4, window_bounds = array<i64: 8, 128>}]} {
    %c0 = arith.constant 0 : index
    %c0_0 = arith.constant 0 : index
    %0 = vector.load %arg1[%c0, %c0_0] : memref<8x128xf32, #tpu.memory_space<vmem>>, vector<8x128xf32>
    %c0_1 = arith.constant 0 : index
    %c0_2 = arith.constant 0 : index
    %1 = vector.load %arg2[%c0_1, %c0_2] : memref<8x128xf32, #tpu.memory_space<vmem>>, vector<8x128xf32>
    %c0_3 = arith.constant 0 : index
    %c0_4 = arith.constant 0 : index
    %2 = vector.load %arg3[%c0_3, %c0_4] : memref<8x128xi8, #tpu.memory_space<vmem>>, vector<8x128xi8>
    %3 = arith.sitofp %2 : vector<8x128xi8> to vector<8x128xf32>
    %4 = arith.subf %0, %1 : vector<8x128xf32>
    %5 = tpu.iota {dimensions = array<i32: 0>} : vector<8x128xi32>
    %c8_i32 = arith.constant 8 : i32
    %6 = arith.muli %arg0, %c8_i32 : i32
    %7 = vector.broadcast %6 : i32 to vector<8x128xi32>
    %8 = arith.addi %5, %7 : vector<8x128xi32>
    %c1_i32 = arith.constant 1 : i32
    %9 = vector.broadcast %c1_i32 : i32 to vector<8x128xi32>
    %10 = arith.cmpi slt, %8, %9 : vector<8x128xi32>
    %cst = arith.constant 0.000000e+00 : f32
    %11 = vector.broadcast %cst : f32 to vector<8x128xf32>
    %12 = arith.select %10, %4, %11 : vector<8x128xi1>, vector<8x128xf32>
    %cst_5 = arith.constant 0.000000e+00 : f32
    %13 = vector.broadcast %cst_5 : f32 to vector<8x128xf32>
    %14 = arith.select %10, %3, %13 : vector<8x128xi1>, vector<8x128xf32>
    %15 = arith.mulf %12, %12 : vector<8x128xf32>
    %16 = arith.mulf %15, %14 : vector<8x128xf32>
    %17 = vector.shape_cast %16 : vector<8x128xf32> to vector<1x8x128xf32>
    %cst_6 = arith.constant dense<0.000000e+00> : vector<8x128xf32>
    %18 = vector.multi_reduction <add>, %17, %cst_6 [0] : vector<1x8x128xf32> to vector<8x128xf32>
    %c0_7 = arith.constant 0 : index
    %c0_8 = arith.constant 0 : index
    %19 = vector.load %arg4[%c0_7, %c0_8] : memref<8x128xf32, #tpu.memory_space<vmem>>, vector<8x128xf32>
    tpu.vector_store %arg4[%c0_7, %c0_8], %18 {strides = array<i32>} : memref<8x128xf32, #tpu.memory_space<vmem>>, vector<8x128xf32>,
    %20 = vector.shape_cast %14 : vector<8x128xf32> to vector<1x8x128xf32>
    %cst_9 = arith.constant dense<0.000000e+00> : vector<8x128xf32>
    %21 = vector.multi_reduction <add>, %20, %cst_9 [0] : vector<1x8x128xf32> to vector<8x128xf32>
    %c0_10 = arith.constant 0 : index
    %c0_11 = arith.constant 0 : index
    %22 = vector.load %arg5[%c0_10, %c0_11] : memref<8x128xf32, #tpu.memory_space<vmem>>, vector<8x128xf32>
    tpu.vector_store %arg5[%c0_10, %c0_11], %21 {strides = array<i32>} : memref<8x128xf32, #tpu.memory_space<vmem>>, vector<8x128xf32>,
    return
  }
  func.func @transform_0(%arg0: i32) -> (i32, i32) {
    %c0_i32 = arith.constant 0 : i32
    %c0_i32_0 = arith.constant 0 : i32
    return %arg0, %c0_i32 : i32, i32
  }
  func.func @transform_1(%arg0: i32) -> (i32, i32) {
    %c0_i32 = arith.constant 0 : i32
    %c0_i32_0 = arith.constant 0 : i32
    return %arg0, %c0_i32 : i32, i32
  }
  func.func @transform_2(%arg0: i32) -> (i32, i32) {
    %c0_i32 = arith.constant 0 : i32
    %c0_i32_0 = arith.constant 0 : i32
    return %arg0, %c0_i32 : i32, i32
  }
  func.func @transform_3(%arg0: i32) -> (i32, i32) {
    %c0_i32 = arith.constant 0 : i32
    %c0_i32_0 = arith.constant 0 : i32
    return %arg0, %c0_i32 : i32, i32
  }
  func.func @transform_4(%arg0: i32) -> (i32, i32) {
    %c0_i32 = arith.constant 0 : i32
    %c0_i32_0 = arith.constant 0 : i32
    return %arg0, %c0_i32 : i32, i32
  }
}

</mosaic_0001>

<bundles_post_ra>
// kernel: tpu_custom_call.1
= control target key start
LH: loop header
LB: loop body
LE: loop exit
PB: predicated region body
PF: predicated region fallthrough
CT: control target
= control target key end

     0   :  { %10 = vsyncpa [#allocation3], 0  ;;  %s240_s0 = inlined_call_operand.hbm [shape: f32[1,128], index: 0, kind: input, shape index: {}]   ;;  %s241_s1 = inlined_call_operand.vmem [shape: f32[1,128], index: 1, kind: input, shape index: {}]   ;;  %s242_s2 = inlined_call_operand.vmem [shape: s8[1,128], index: 2, kind: input, shape index: {}]   ;;  %s243_s3 = inlined_call_operand.hbm [shape: f32[8,128], index: 3, kind: output, shape index: {0}]   ;;  %s244_s4 = inlined_call_operand.hbm [shape: f32[8,128], index: 4, kind: output, shape index: {1}]  }
   0x1   :  { %11 = vsyncpa [#allocation4], 0 }
   0x2   :  { %12 = vsyncpa [#allocation7], 0 }
   0x3   :  { %17 = vsyncadd [#allocation3], 112  ;;  %s165_s15 = smov [#allocation2]   ;;  %s93_s19 = scalar_lea.hbm %s240_s0, 16 }
   0x4   :  { %s18_s16 = sshll.u32 %s165_s15, 4  ;;  %p94_p0 = scmp.ne.s32.totalorder %s240_s0, %s93_s19  ;;  %s19_s16 = int_to_ptr.vmem [resolvable:$true] %s18_s16 }
   0x5   :  { %p97_p1 = scmp.lt.u32.totalorder %s93_s19, %s240_s0 }
   0x7   :  { %p99_p2 = pnand %p97_p1, %p94_p0 }
   0x9   :  { %102 = shalt.err (!%p99_p2)
}
   0xa   :  { %s103_s24 = scalar_lea.vmem %s19_s16, 16  ;;  %s107_s25 = scalar_lea.vmem %s19_s16, 128 }
   0xb   :  { %p104_p3 = scmp.ne.s32.totalorder %s19_s16, %s103_s24  ;;  %p108_p4 = scmp.lt.s32.totalorder %s19_s16, %s19_s16 }
   0xc   :  { %p109_p5 = scmp.lt.s32.totalorder %s107_s25, %s103_s24 }
   0xe   :  { %p110_p6 = por %p109_p5, %p108_p4 }
  0x10   :  { %p111_p7 = pnand %p110_p6, %p104_p3 }
  0x12   :  { %114 = shalt.err (!%p111_p7)
}
  0x13   :  { %s166_s26 = smov 16   ;;  %s167_s27 = smov 1  }
  0x14   :  { %24 = dma.hbm_to_vmem [thread:$0]  %s240_s0, 16, %s19_s16, [#allocation3], %s166_s26, %s166_s26, %s167_s27  }
  0x15   :  { %159 = dma.done.wait [#allocation3], 128  }
  0x16   :  { %160 = vsyncadd [#allocation3], 4294967168  ;;  %v41_v0 = vlaneseq  ;;  %v32_v2 = vld [vmem:[#allocation2] sm:$0xff]  ;;  %s168_s0 = smov [#allocation6]  }
  0x17   :  { %v33_v3 = vld [vmem:[%s241_s1] sm:$0xff]  ;;  %s75_s10 = sshll.u32 %s168_s0, 4  ;;  %s169_s1 = smov [#allocation5]   ;;  %s76_s10 = int_to_ptr.vmem [resolvable:$true] %s75_s10 }
  0x18   :  { %v42_v1 = vshrl.u32 %v41_v0, 7  ;;  %v34_v4 = vld [vmem:[%s242_s2] sm:$0x1]  ;;  %v35_v5 = vld [vmem:[%s242_s2 + $0x1] sm:$0x1]  ;;  %v40_v7 = vsub.f32 %v32_v2, %v33_v3  ;;  %s65_s11 = sshll.u32 %s169_s1, 4  ;;  %p120_p9 = scmp.lt.s32.totalorder %s76_s10, %s76_s10  ;;  %s66_s11 = int_to_ptr.vmem [resolvable:$true] %s65_s11 }
  0x19   :  { %v36_v6 = vunpack.c.0.s8 %v34_v4  ;;  %v37_v8 = vunpack.c.0.s8 %v35_v5  ;;  %s115_s12 = scalar_lea.vmem %s76_s10, 128 }
  0x1a   :  { %vm46_vm0 = vcmp.lt.s32.totalorder %v42_v1, 1  ;;  %p116_p8 = scmp.ne.s32.totalorder %s76_s10, %s115_s12  ;;  %p121_p10 = scmp.lt.s32.totalorder %s115_s12, %s115_s12 }
  0x1b   :  { %v38_v9 = vcvt.s32.f32 %v36_v6  ;;  %v47_v10 = vsel %vm46_vm0, %v40_v7, 0.0  ;;  %v39_v11 = vcvt.s32.f32 %v37_v8 }
  0x1c   :  { %v53_v12 = vmul.f32 %v47_v10, %v47_v10  ;;  %p122_p11 = por %p121_p10, %p120_p9 }
  0x1d   :  { %v50_v13 = vcombine.low %v38_v9, %v39_v11 }
  0x1e   :  { %p123_p12 = pnand %p122_p11, %p116_p8 }
  0x1f   :  { %v52_v14 = vsel %vm46_vm0, %v50_v13, 0.0 }
  0x20   :  { %v54_v15 = vmul.f32 %v53_v12, %v52_v14  ;;  %58 = vst [vmem:[#allocation6] sm:$0xff] %v52_v14 }
  0x21   :  { %126 = shalt.err (!%p123_p12)
}
  0x22   :  { %s127_s14 = scalar_lea.hbm %s244_s4, 128 }
  0x23   :  { %p128_p13 = scmp.ne.s32.totalorder %s244_s4, %s127_s14  ;;  %p131_p0 = scmp.lt.u32.totalorder %s127_s14, %s244_s4 }
  0x25   :  { %p133_p1 = pnand %p131_p0, %p128_p13 }
  0x27   :  { %136 = shalt.err (!%p133_p1)
}
  0x28   :  { %78 = dma.vmem_to_hbm [thread:$0]  %s76_s10, 128, %s244_s4, [#allocation7]   ;;  %56 = vst [vmem:[#allocation5] sm:$0xff] %v54_v15 }
  0x29   :  { %s137_s21 = scalar_lea.vmem %s66_s11, 128  ;;  %p142_p3 = scmp.lt.s32.totalorder %s66_s11, %s66_s11 }
  0x2a   :  { %p138_p2 = scmp.ne.s32.totalorder %s66_s11, %s137_s21  ;;  %p143_p4 = scmp.lt.s32.totalorder %s137_s21, %s137_s21 }
  0x2c   :  { %p144_p5 = por %p143_p4, %p142_p3 }
  0x2e   :  { %p145_p6 = pnand %p144_p5, %p138_p2 }
  0x30   :  { %148 = shalt.err (!%p145_p6)
}
  0x31   :  { %s149_s24 = scalar_lea.hbm %s243_s3, 128 }
  0x32   :  { %p150_p7 = scmp.ne.s32.totalorder %s243_s3, %s149_s24  ;;  %p153_p8 = scmp.lt.u32.totalorder %s149_s24, %s243_s3 }
  0x34   :  { %p155_p9 = pnand %p153_p8, %p150_p7 }
  0x36   :  { %158 = shalt.err (!%p155_p9)
}
  0x37   :  { %68 = dma.vmem_to_hbm [thread:$0]  %s66_s11, 128, %s243_s3, [#allocation4]  }
  0x38   :  { %161 = dma.done.wait [#allocation4], 128  }
  0x39   :  { %162 = vsyncadd [#allocation4], 4294967168 }
  0x3a   :  { %163 = dma.done.wait [#allocation7], 128  }
  0x3b   :  { %164 = vsyncadd [#allocation7], 4294967168 }
  0x3c   :  { %85 = vsyncpa [#allocation3], 1 }
  0x3d   :  { %86 = vsyncpa [#allocation4], 1 }
  0x3e   :  { %87 = vsyncpa [#allocation7], 1 }

</bundles_post_ra>
